<compile_context>
chip_gen: v7x
topology: tpu7x:2x2x1
jax: 0.10.0
libtpu: 0.0.40
codegen_flags: <defaults>
</compile_context>

<pallas_src>
import functools

import jax
import jax.numpy as jnp
import numpy as np
from jax.experimental import pallas as pl
from jax.experimental.pallas import tpu as pltpu


def _relbasis_kernel(x_ref, a_ref, o_ref, *, norm: bool):
    # x_ref: (tn, I, Kblk)   a_ref: (I, M, Kblk)   o_ref: (tn, M, Kblk)
    n_i = x_ref.shape[1]

    acc = jnp.zeros(o_ref.shape, jnp.float32)
    denom = jnp.zeros(a_ref.shape[1:], jnp.float32) if norm else None  # (M, Kblk)

    for i in range(n_i):  # static unroll; in_features is small
        xi = x_ref[:, i:i + 1, :].astype(jnp.float32)   # (tn, 1, Kblk) contiguous slice
        ai = a_ref[i].astype(jnp.float32)               # (M, Kblk) natural tile
        acc = acc + xi * ai[None, :, :]                 # VPU MAC, K on lanes
        if norm:
            denom = denom + ai * ai                     # fused denominator

    if norm:
        acc = acc * (1.0 / denom)[None, :, :]           # exact; no eps (matches torch)

    o_ref[...] = acc.astype(o_ref.dtype)


def _pick_tiles(N, I, M, K, vmem_cap_bytes):
    """Generation-aware tile sizes: (tn, kblk)."""
    tile_budget = vmem_cap_bytes * 3 // 8       # ~24 MiB on v7x (64 MiB), ~48 MiB on v5e/v6e
    acc_cap = 32 * 1024                         # f32 elems ~= half the 64x4KiB vreg file

    cands = ([K] if K <= 2048 else []) + [c for c in (2048, 1024, 512, 256, 128) if c < K]
    k_cands, seen = [], set()
    for c in cands:
        if c not in seen:
            seen.add(c)
            k_cands.append(c)

    for kblk in k_cands:
        tn = max(1, min(N, acc_cap // max(M * kblk, 1)))
        # f32 blocks, double-buffered: x tile + anchor tile + out tile
        per_step_bytes = (tn * I * kblk + I * M * kblk + tn * M * kblk) * 4 * 2
        if per_step_bytes <= tile_budget:
            return tn, kblk
    return 1, min(K, 128)


def rel_basis(x, anchors, n_anchors: int, norm: bool = False):
    """x: (N, I, K) f32, anchors: (M_total, I, K) f32 -> (N, n_anchors, K) f32."""
    N, I, K = x.shape
    M = n_anchors
    # Tiny anchor tensor: slice + transpose once so a_ref[i] is a natural (M, Kblk) tile.
    a_t = jnp.transpose(anchors[:n_anchors], (1, 0, 2))     # (I, M, K)

    try:
        vmem_cap = int(pltpu.get_tpu_info().vmem_capacity_bytes)
    except Exception:
        vmem_cap = 64 << 20                                  # conservative (v7x-sized) fallback

    tn, kblk = _pick_tiles(N, I, M, K, vmem_cap)
    grid = (pl.cdiv(N, tn), pl.cdiv(K, kblk))

    return pl.pallas_call(
        functools.partial(_relbasis_kernel, norm=norm),
        out_shape=jax.ShapeDtypeStruct((N, M, K), jnp.float32),
        grid=grid,
        in_specs=[
            pl.BlockSpec((tn, I, kblk), lambda n, k: (n, 0, k)),
            pl.BlockSpec((I, M, kblk), lambda n, k: (0, 0, k)),
        ],
        out_specs=pl.BlockSpec((tn, M, kblk), lambda n, k: (n, 0, k)),
        compiler_params=pltpu.CompilerParams(
            dimension_semantics=("parallel", "parallel"),
            vmem_limit_bytes=int(vmem_cap * 3 // 4),         # headroom for Mosaic scratch
        ),
    )(x, a_t)


def _reference(x, anchors, n_anchors, norm):
    a = anchors[:n_anchors]
    out = jnp.einsum('nik,mik->nmk', x, a)
    if norm:
        out = out / jnp.sum(a ** 2, axis=1)                  # (M, K) broadcast over N
    return out


if __name__ == "__main__":
    key = jax.random.PRNGKey(0)

    ok = True
    # (N, in_features, samples, M_total, n_anchors)
    cases = [
        (2, 8, 16, 5, 4),        # tiny: single block
        (8, 8, 4096, 6, 4),      # exercises the (N-tile, K-block) grid: kblk=2048, tn=4
    ]
    for N, in_features, samples, M_total, n_anchors in cases:
        kx, ka, key = jax.random.split(key, 3)
        x = jax.random.normal(kx, (N, in_features, samples), dtype=jnp.float32)
        anchors = jax.random.normal(ka, (M_total, in_features, samples), dtype=jnp.float32)

        for norm in (False, True):
            out = jax.block_until_ready(rel_basis(x, anchors, n_anchors, norm=norm))
            ref = _reference(x, anchors, n_anchors, norm)
            assert out.shape == (N, n_anchors, samples)
            ok &= bool(np.allclose(np.asarray(out), np.asarray(ref), rtol=1e-5, atol=1e-5))

    print("KERNEL_OK" if ok else "MISMATCH")
</pallas_src>

<mosaic_0001>
module attributes {stable_mosaic.version = 11 : i64} {
  func.func @_relbasis_kernel(%arg0: i32, %arg1: i32, %arg2: memref<2x8x16xf32, #tpu.memory_space<vmem>>, %arg3: memref<8x4x16xf32, #tpu.memory_space<vmem>>, %arg4: memref<2x4x16xf32, #tpu.memory_space<vmem>>) attributes {dimension_semantics = [#tpu.dimension_semantics<parallel>, #tpu.dimension_semantics<parallel>], iteration_bounds = array<i64: 1, 1>, scalar_prefetch = 0 : i64, scratch_operands = 0 : i64, tpu.core_type = #tpu.core_type<tc>, window_params = [{transform_indices = @transform_0, window_bounds = array<i64: 2, 8, 16>}, {transform_indices = @transform_1, window_bounds = array<i64: 8, 4, 16>}, {transform_indices = @transform_2, window_bounds = array<i64: 2, 4, 16>}]} {
    %cst = arith.constant 0.000000e+00 : f32
    %0 = vector.broadcast %cst : f32 to vector<2x4x16xf32>
    %c0 = arith.constant 0 : index
    %c0_0 = arith.constant 0 : index
    %c0_1 = arith.constant 0 : index
    %1 = vector.load %arg2[%c0, %c0_0, %c0_1] : memref<2x8x16xf32, #tpu.memory_space<vmem>>, vector<2x1x16xf32>
    %c0_2 = arith.constant 0 : index
    %c0_3 = arith.constant 0 : index
    %c0_4 = arith.constant 0 : index
    %2 = vector.load %arg3[%c0_2, %c0_3, %c0_4] : memref<8x4x16xf32, #tpu.memory_space<vmem>>, vector<1x4x16xf32>
    %3 = vector.shape_cast %2 : vector<1x4x16xf32> to vector<4x16xf32>
    %4 = vector.shape_cast %3 : vector<4x16xf32> to vector<1x4x16xf32>
    %5 = vector.broadcast %1 : vector<2x1x16xf32> to vector<2x4x16xf32>
    %6 = vector.broadcast %4 : vector<1x4x16xf32> to vector<2x4x16xf32>
    %7 = arith.mulf %5, %6 : vector<2x4x16xf32>
    %8 = arith.addf %0, %7 : vector<2x4x16xf32>
    %c0_5 = arith.constant 0 : index
    %c1 = arith.constant 1 : index
    %c0_6 = arith.constant 0 : index
    %9 = vector.load %arg2[%c0_5, %c1, %c0_6] : memref<2x8x16xf32, #tpu.memory_space<vmem>>, vector<2x1x16xf32>
    %c1_7 = arith.constant 1 : index
    %c0_8 = arith.constant 0 : index
    %c0_9 = arith.constant 0 : index
    %10 = vector.load %arg3[%c1_7, %c0_8, %c0_9] : memref<8x4x16xf32, #tpu.memory_space<vmem>>, vector<1x4x16xf32>
    %11 = vector.shape_cast %10 : vector<1x4x16xf32> to vector<4x16xf32>
    %12 = vector.shape_cast %11 : vector<4x16xf32> to vector<1x4x16xf32>
    %13 = vector.broadcast %9 : vector<2x1x16xf32> to vector<2x4x16xf32>
    %14 = vector.broadcast %12 : vector<1x4x16xf32> to vector<2x4x16xf32>
    %15 = arith.mulf %13, %14 : vector<2x4x16xf32>
    %16 = arith.addf %8, %15 : vector<2x4x16xf32>
    %c0_10 = arith.constant 0 : index
    %c2 = arith.constant 2 : index
    %c0_11 = arith.constant 0 : index
    %17 = vector.load %arg2[%c0_10, %c2, %c0_11] : memref<2x8x16xf32, #tpu.memory_space<vmem>>, vector<2x1x16xf32>
    %c2_12 = arith.constant 2 : index
    %c0_13 = arith.constant 0 : index
    %c0_14 = arith.constant 0 : index
    %18 = vector.load %arg3[%c2_12, %c0_13, %c0_14] : memref<8x4x16xf32, #tpu.memory_space<vmem>>, vector<1x4x16xf32>
    %19 = vector.shape_cast %18 : vector<1x4x16xf32> to vector<4x16xf32>
    %20 = vector.shape_cast %19 : vector<4x16xf32> to vector<1x4x16xf32>
    %21 = vector.broadcast %17 : vector<2x1x16xf32> to vector<2x4x16xf32>
    %22 = vector.broadcast %20 : vector<1x4x16xf32> to vector<2x4x16xf32>
    %23 = arith.mulf %21, %22 : vector<2x4x16xf32>
    %24 = arith.addf %16, %23 : vector<2x4x16xf32>
    %c0_15 = arith.constant 0 : index
    %c3 = arith.constant 3 : index
    %c0_16 = arith.constant 0 : index
    %25 = vector.load %arg2[%c0_15, %c3, %c0_16] : memref<2x8x16xf32, #tpu.memory_space<vmem>>, vector<2x1x16xf32>
    %c3_17 = arith.constant 3 : index
    %c0_18 = arith.constant 0 : index
    %c0_19 = arith.constant 0 : index
    %26 = vector.load %arg3[%c3_17, %c0_18, %c0_19] : memref<8x4x16xf32, #tpu.memory_space<vmem>>, vector<1x4x16xf32>
    %27 = vector.shape_cast %26 : vector<1x4x16xf32> to vector<4x16xf32>
    %28 = vector.shape_cast %27 : vector<4x16xf32> to vector<1x4x16xf32>
    %29 = vector.broadcast %25 : vector<2x1x16xf32> to vector<2x4x16xf32>
    %30 = vector.broadcast %28 : vector<1x4x16xf32> to vector<2x4x16xf32>
    %31 = arith.mulf %29, %30 : vector<2x4x16xf32>
    %32 = arith.addf %24, %31 : vector<2x4x16xf32>
    %c0_20 = arith.constant 0 : index
    %c4 = arith.constant 4 : index
    %c0_21 = arith.constant 0 : index
    %33 = vector.load %arg2[%c0_20, %c4, %c0_21] : memref<2x8x16xf32, #tpu.memory_space<vmem>>, vector<2x1x16xf32>
    %c4_22 = arith.constant 4 : index
    %c0_23 = arith.constant 0 : index
    %c0_24 = arith.constant 0 : index
    %34 = vector.load %arg3[%c4_22, %c0_23, %c0_24] : memref<8x4x16xf32, #tpu.memory_space<vmem>>, vector<1x4x16xf32>
    %35 = vector.shape_cast %34 : vector<1x4x16xf32> to vector<4x16xf32>
    %36 = vector.shape_cast %35 : vector<4x16xf32> to vector<1x4x16xf32>
    %37 = vector.broadcast %33 : vector<2x1x16xf32> to vector<2x4x16xf32>
    %38 = vector.broadcast %36 : vector<1x4x16xf32> to vector<2x4x16xf32>
    %39 = arith.mulf %37, %38 : vector<2x4x16xf32>
    %40 = arith.addf %32, %39 : vector<2x4x16xf32>
    %c0_25 = arith.constant 0 : index
    %c5 = arith.constant 5 : index
    %c0_26 = arith.constant 0 : index
    %41 = vector.load %arg2[%c0_25, %c5, %c0_26] : memref<2x8x16xf32, #tpu.memory_space<vmem>>, vector<2x1x16xf32>
    %c5_27 = arith.constant 5 : index
    %c0_28 = arith.constant 0 : index
    %c0_29 = arith.constant 0 : index
    %42 = vector.load %arg3[%c5_27, %c0_28, %c0_29] : memref<8x4x16xf32, #tpu.memory_space<vmem>>, vector<1x4x16xf32>
    %43 = vector.shape_cast %42 : vector<1x4x16xf32> to vector<4x16xf32>
    %44 = vector.shape_cast %43 : vector<4x16xf32> to vector<1x4x16xf32>
    %45 = vector.broadcast %41 : vector<2x1x16xf32> to vector<2x4x16xf32>
    %46 = vector.broadcast %44 : vector<1x4x16xf32> to vector<2x4x16xf32>
    %47 = arith.mulf %45, %46 : vector<2x4x16xf32>
    %48 = arith.addf %40, %47 : vector<2x4x16xf32>
    %c0_30 = arith.constant 0 : index
    %c6 = arith.constant 6 : index
    %c0_31 = arith.constant 0 : index
    %49 = vector.load %arg2[%c0_30, %c6, %c0_31] : memref<2x8x16xf32, #tpu.memory_space<vmem>>, vector<2x1x16xf32>
    %c6_32 = arith.constant 6 : index
    %c0_33 = arith.constant 0 : index
    %c0_34 = arith.constant 0 : index
    %50 = vector.load %arg3[%c6_32, %c0_33, %c0_34] : memref<8x4x16xf32, #tpu.memory_space<vmem>>, vector<1x4x16xf32>
    %51 = vector.shape_cast %50 : vector<1x4x16xf32> to vector<4x16xf32>
    %52 = vector.shape_cast %51 : vector<4x16xf32> to vector<1x4x16xf32>
    %53 = vector.broadcast %49 : vector<2x1x16xf32> to vector<2x4x16xf32>
    %54 = vector.broadcast %52 : vector<1x4x16xf32> to vector<2x4x16xf32>
    %55 = arith.mulf %53, %54 : vector<2x4x16xf32>
    %56 = arith.addf %48, %55 : vector<2x4x16xf32>
    %c0_35 = arith.constant 0 : index
    %c7 = arith.constant 7 : index
    %c0_36 = arith.constant 0 : index
    %57 = vector.load %arg2[%c0_35, %c7, %c0_36] : memref<2x8x16xf32, #tpu.memory_space<vmem>>, vector<2x1x16xf32>
    %c7_37 = arith.constant 7 : index
    %c0_38 = arith.constant 0 : index
    %c0_39 = arith.constant 0 : index
    %58 = vector.load %arg3[%c7_37, %c0_38, %c0_39] : memref<8x4x16xf32, #tpu.memory_space<vmem>>, vector<1x4x16xf32>
    %59 = vector.shape_cast %58 : vector<1x4x16xf32> to vector<4x16xf32>
    %60 = vector.shape_cast %59 : vector<4x16xf32> to vector<1x4x16xf32>
    %61 = vector.broadcast %57 : vector<2x1x16xf32> to vector<2x4x16xf32>
    %62 = vector.broadcast %60 : vector<1x4x16xf32> to vector<2x4x16xf32>
    %63 = arith.mulf %61, %62 : vector<2x4x16xf32>
    %64 = arith.addf %56, %63 : vector<2x4x16xf32>
    %c0_40 = arith.constant 0 : index
    %c0_41 = arith.constant 0 : index
    %c0_42 = arith.constant 0 : index
    %65 = vector.load %arg4[%c0_40, %c0_41, %c0_42] : memref<2x4x16xf32, #tpu.memory_space<vmem>>, vector<2x4x16xf32>
    tpu.vector_store %arg4[%c0_40, %c0_41, %c0_42], %64 {strides = array<i32>} : memref<2x4x16xf32, #tpu.memory_space<vmem>>, vector<2x4x16xf32>,
    return
  }
  func.func @transform_0(%arg0: i32, %arg1: i32) -> (i32, i32, i32) {
    %c0_i32 = arith.constant 0 : i32
    %c0_i32_0 = arith.constant 0 : i32
    return %arg0, %c0_i32, %arg1 : i32, i32, i32
  }
  func.func @transform_1(%arg0: i32, %arg1: i32) -> (i32, i32, i32) {
    %c0_i32 = arith.constant 0 : i32
    %c0_i32_0 = arith.constant 0 : i32
    %c0_i32_1 = arith.constant 0 : i32
    return %c0_i32, %c0_i32_0, %arg1 : i32, i32, i32
  }
  func.func @transform_2(%arg0: i32, %arg1: i32) -> (i32, i32, i32) {
    %c0_i32 = arith.constant 0 : i32
    %c0_i32_0 = arith.constant 0 : i32
    return %arg0, %c0_i32, %arg1 : i32, i32, i32
  }
}

</mosaic_0001>

<bundles_post_ra>
// kernel: tpu_custom_call.1
= control target key start
LH: loop header
LB: loop body
LE: loop exit
PB: predicated region body
PF: predicated region fallthrough
CT: control target
= control target key end

     0   :  { %7 = vsyncpa [#allocation3], 0  ;;  %s347_s0 = inlined_call_operand.hbm [shape: f32[2,8,16], index: 0, kind: input, shape index: {}]   ;;  %s348_s1 = inlined_call_operand.hbm [shape: f32[8,4,16], index: 1, kind: input, shape index: {}]   ;;  %s349_s2 = inlined_call_operand.hbm [shape: f32[2,4,16], index: 2, kind: output, shape index: {}]  }
   0x1   :  { %8 = vsyncpa [#allocation6], 0 }
   0x2   :  { %9 = vsyncpa [#allocation4], 0  ;;  %s283_s9 = smov [#allocation2]   ;;  %s211_s13 = scalar_lea.hbm %s347_s0, 256 }
   0x3   :  { %s15_s10 = sshll.u32 %s283_s9, 4  ;;  %p212_p0 = scmp.ne.s32.totalorder %s347_s0, %s211_s13  ;;  %s16_s10 = int_to_ptr.vmem [resolvable:$true] %s15_s10 }
   0x4   :  { %p215_p1 = scmp.lt.u32.totalorder %s211_s13, %s347_s0 }
   0x6   :  { %p217_p2 = pnand %p215_p1, %p212_p0 }
   0x8   :  { %220 = shalt.err (!%p217_p2)
}
   0x9   :  { %s221_s18 = scalar_lea.vmem %s16_s10, 256  ;;  %p226_p4 = scmp.lt.s32.totalorder %s16_s10, %s16_s10 }
   0xa   :  { %p222_p3 = scmp.ne.s32.totalorder %s16_s10, %s221_s18  ;;  %p227_p5 = scmp.lt.s32.totalorder %s221_s18, %s221_s18 }
   0xc   :  { %p228_p6 = por %p227_p5, %p226_p4 }
   0xe   :  { %p229_p7 = pnand %p228_p6, %p222_p3 }
  0x10   :  { %232 = shalt.err (!%p229_p7)
}
  0x11   :  { %s284_s19 = smov 128   ;;  %s285_s20 = smov 8  }
  0x12   :  { %21 = dma.hbm_to_vmem [thread:$0]  %s347_s0, 256, %s16_s10, [#allocation3], %s284_s19, %s284_s19, %s285_s20  }
  0x13   :  { %s286_s23 = smov [#allocation5]   ;;  %s233_s27 = scalar_lea.hbm %s348_s1, 512 }
  0x14   :  { %s27_s24 = sshll.u32 %s286_s23, 4  ;;  %p234_p8 = scmp.ne.s32.totalorder %s348_s1, %s233_s27  ;;  %s28_s24 = int_to_ptr.vmem [resolvable:$true] %s27_s24 }
  0x15   :  { %p237_p9 = scmp.lt.u32.totalorder %s233_s27, %s348_s1 }
  0x17   :  { %p239_p10 = pnand %p237_p9, %p234_p8 }
  0x19   :  { %242 = shalt.err (!%p239_p10)
}
  0x1a   :  { %s243_s4 = scalar_lea.vmem %s28_s24, 512  ;;  %p248_p12 = scmp.lt.s32.totalorder %s28_s24, %s28_s24 }
  0x1b   :  { %p244_p11 = scmp.ne.s32.totalorder %s28_s24, %s243_s4  ;;  %p249_p13 = scmp.lt.s32.totalorder %s243_s4, %s243_s4 }
  0x1d   :  { %p250_p0 = por %p249_p13, %p248_p12 }
  0x1f   :  { %p251_p1 = pnand %p250_p0, %p244_p11 }
  0x21   :  { %254 = shalt.err (!%p251_p1)
}
  0x22   :  { %s287_s0 = smov 64   ;;  %s288_s5 = smov 4  }
  0x23   :  { %33 = dma.hbm_to_vmem [thread:$0]  %s348_s1, 512, %s28_s24, [#allocation6], %s287_s0, %s287_s0, %s288_s5  }
  0x24   :  { %277 = dma.done.wait [#allocation3], 256  }
  0x25   :  { %278 = vsyncadd [#allocation3], 4294967040 }
  0x26   :  { %279 = dma.done.wait [#allocation6], 512  }
  0x27   :  { %280 = vsyncadd [#allocation6], 4294966784  ;;  %v188_v0 = vld [vmem:[#allocation2] ss:$0 sm:$0xff]  ;;  %v42_v1 = vld [vmem:[#allocation5] sm:$0xf] }
  0x28   :  { %v190_v2 = vld [vmem:[#allocation2 + $0x1] ss:$0 sm:$0xff]  ;;  %v51_v3 = vmul.f32 %v188_v0, %v42_v1  ;;  %v58_v4 = vld [vmem:[#allocation5 + $0x4] sm:$0xf]  ;;  %v192_v5 = vld [vmem:[#allocation2 + $0x2] ss:$0 sm:$0xff] }
  0x29   :  { %v74_v6 = vld [vmem:[#allocation5 + $0x8] sm:$0xf]  ;;  %v67_v7 = vmul.f32 %v190_v2, %v58_v4  ;;  %v194_v9 = vld [vmem:[#allocation2 + $0x3] ss:$0 sm:$0xff]  ;;  %v90_v10 = vld [vmem:[#allocation5 + $0xc] sm:$0xf] }
  0x2a   :  { %v83_v8 = vmul.f32 %v192_v5, %v74_v6  ;;  %v196_v11 = vld [vmem:[#allocation2 + $0x4] ss:$0 sm:$0xff]  ;;  %v106_v12 = vld [vmem:[#allocation5 + $0x10] sm:$0xf]  ;;  %v99_v14 = vmul.f32 %v194_v9, %v90_v10  ;;  %v198_v15 = vld [vmem:[#allocation2 + $0x5] ss:$0 sm:$0xff] }
  0x2b   :  { %v69_v13 = vadd.f32 %v67_v7, %v51_v3  ;;  %v122_v16 = vld [vmem:[#allocation5 + $0x14] sm:$0xf]  ;;  %v189_v17 = vld [vmem:[#allocation2 + $0x8] ss:$0 sm:$0xff]  ;;  %v191_v18 = vld [vmem:[#allocation2 + $0x9] ss:$0 sm:$0xff]  ;;  %v115_v20 = vmul.f32 %v196_v11, %v106_v12 }
  0x2c   :  { %v52_v21 = vmul.f32 %v189_v17, %v42_v1  ;;  %v68_v22 = vmul.f32 %v191_v18, %v58_v4  ;;  %v193_v23 = vld [vmem:[#allocation2 + $0xa] ss:$0 sm:$0xff]  ;;  %v195_v24 = vld [vmem:[#allocation2 + $0xb] ss:$0 sm:$0xff]  ;;  %v200_v25 = vld [vmem:[#allocation2 + $0x6] ss:$0 sm:$0xff]  ;;  %v131_v30 = vmul.f32 %v198_v15, %v122_v16 }
  0x2d   :  { %v85_v19 = vadd.f32 %v83_v8, %v69_v13  ;;  %v138_v26 = vld [vmem:[#allocation5 + $0x18] sm:$0xf]  ;;  %v84_v27 = vmul.f32 %v193_v23, %v74_v6  ;;  %v197_v28 = vld [vmem:[#allocation2 + $0xc] ss:$0 sm:$0xff]  ;;  %v100_v32 = vmul.f32 %v195_v24, %v90_v10  ;;  %v202_v33 = vld [vmem:[#allocation2 + $0x7] ss:$0 sm:$0xff] }
  0x2e   :  { %v70_v31 = vadd.f32 %v68_v22, %v52_v21  ;;  %v154_v34 = vld [vmem:[#allocation5 + $0x1c] sm:$0xf]  ;;  %v147_v37 = vmul.f32 %v200_v25, %v138_v26  ;;  %v116_v39 = vmul.f32 %v197_v28, %v106_v12  ;;  %vm167_vm0 = vcmask 125952   ;;  %s289_s1 = smov [#allocation7]  }
  0x2f   :  { %v101_v29 = vadd.f32 %v99_v14, %v85_v19  ;;  %v199_v35 = vld [vmem:[#allocation2 + $0xd] ss:$0 sm:$0xff]  ;;  %v201_v40 = vld [vmem:[#allocation2 + $0xe] ss:$0 sm:$0xff]  ;;  %v163_v42 = vmul.f32 %v202_v33, %v154_v34  ;;  %v203_v45 = vld [vmem:[#allocation2 + $0xf] ss:$0 sm:$0xff] }
  0x30   :  { %v86_v38 = vadd.f32 %v84_v27, %v70_v31  ;;  %v132_v44 = vmul.f32 %v199_v35, %v122_v16  ;;  %v148_v48 = vmul.f32 %v201_v40, %v138_v26  ;;  %v164_v51 = vmul.f32 %v203_v45, %v154_v34  ;;  %s175_s8 = sshll.u32 %s289_s1, 4  ;;  %s176_s8 = int_to_ptr.vmem [resolvable:$true] %s175_s8 }
  0x31   :  { %v117_v36 = vadd.f32 %v115_v20, %v101_v29  ;;  %s255_s9 = scalar_lea.vmem %s176_s8, 128  ;;  %p260_p3 = scmp.lt.s32.totalorder %s176_s8, %s176_s8 }
  0x32   :  { %v102_v43 = vadd.f32 %v100_v32, %v86_v38  ;;  %p256_p2 = scmp.ne.s32.totalorder %s176_s8, %s255_s9  ;;  %p261_p4 = scmp.lt.s32.totalorder %s255_s9, %s255_s9 }
  0x33   :  { %v133_v41 = vadd.f32 %v131_v30, %v117_v36 }
  0x34   :  { %v118_v47 = vadd.f32 %v116_v39, %v102_v43  ;;  %p262_p5 = por %p261_p4, %p260_p3 }
  0x35   :  { %v149_v46 = vadd.f32 %v147_v37, %v133_v41 }
  0x36   :  { %v134_v50 = vadd.f32 %v132_v44, %v118_v47  ;;  %p263_p6 = pnand %p262_p5, %p256_p2 }
  0x37   :  { %v165_v49 = vadd.f32 %v163_v42, %v149_v46 }
  0x38   :  { %v150_v52 = vadd.f32 %v148_v48, %v134_v50 }
  0x39   :  { %168 = vst.msk [vmem:[#allocation7] sm:$0xf] %vm167_vm0, %v165_v49 }
  0x3a   :  { %v166_v53 = vadd.f32 %v164_v51, %v150_v52 }
  0x3c   :  { %169 = vst.msk [vmem:[#allocation7 + $0x4] sm:$0xf] %vm167_vm0, %v166_v53 }
  0x3d   :  { %266 = shalt.err (!%p263_p6)
}
  0x3e   :  { %s267_s12 = scalar_lea.hbm %s349_s2, 128 }
  0x3f   :  { %p268_p7 = scmp.ne.s32.totalorder %s349_s2, %s267_s12  ;;  %p271_p8 = scmp.lt.u32.totalorder %s267_s12, %s349_s2 }
  0x41   :  { %p273_p9 = pnand %p271_p8, %p268_p7 }
  0x43   :  { %276 = shalt.err (!%p273_p9)
}
  0x44   :  { %181 = dma.vmem_to_hbm [thread:$0]  %s176_s8, 128, %s349_s2, [#allocation4], %s287_s0, %s287_s0, %s288_s5  }
  0x45   :  { %281 = dma.done.wait [#allocation4], 128  }
  0x46   :  { %282 = vsyncadd [#allocation4], 4294967168 }
  0x47   :  { %185 = vsyncpa [#allocation3], 1 }
  0x48   :  { %186 = vsyncpa [#allocation6], 1 }
  0x49   :  { %187 = vsyncpa [#allocation4], 1 }

</bundles_post_ra>
